<compile_context>
chip_gen: v5e
topology: v5e:2x2
jax: 0.10.0
libtpu: 0.0.40
codegen_flags: <defaults>
</compile_context>

<pallas_src>
import functools

import jax
import jax.numpy as jnp
from jax.experimental import pallas as pl
from jax.experimental.pallas import tpu as pltpu


def _round_up(x, m):
    return (x + m - 1) // m * m


def _vmem_capacity_bytes():
    # Generation-aware VMEM capacity (v5e/v6e: 128 MiB, v7x: 64 MiB per TC).
    # Fall back to the conservative 64 MiB if the query is unavailable.
    try:
        info = pltpu.get_tpu_info()
        cap = getattr(info, "vmem_capacity_bytes", None)
        if cap:
            return int(cap)
    except Exception:
        pass
    return 64 * 1024 * 1024


def _cores_per_chip():
    # A 2-way leading grid split only helps on multi-TensorCore chips
    # (v4/v5p megacore, v7x). On 1-TC chips (v5e/v6e) it is just a serial
    # loop that can add padding, so default to 1 there.
    try:
        kind = (jax.devices()[0].device_kind or "").lower()
        if any(tag in kind for tag in ("v4", "v5p", "7")):
            return 2
    except Exception:
        pass
    return 1


def _truncated_loss_kernel(logits_ref, labels_ref, w_ref, out_ref, *,
                           q, k, n_rows, steps):
    # grid = (cores, steps): axis 0 is "parallel" (megacore split), axis 1 is
    # the sequential streaming axis. The output block index depends only on
    # the core id, so it stays resident in VMEM across axis 1 -> accumulator.
    c = pl.program_id(0)
    i = pl.program_id(1)

    @pl.when(i == 0)
    def _():
        out_ref[...] = jnp.zeros_like(out_ref)

    x = logits_ref[...].astype(jnp.float32)        # [tn, C]
    idx = labels_ref[...]                          # [tn, 1] int32 class index
    w = w_ref[...]                                 # [tn, 1] f32 gathered weight
    tn, C = x.shape

    # Row-stable softmax denominator. exp(x - m) feeds ONLY the row sum, so
    # it can be fused per-vreg (no materialized [tn, C] f32 tile).
    m = jnp.max(x, axis=-1, keepdims=True)                       # [tn, 1]
    s = jnp.sum(jnp.exp(x - m), axis=-1, keepdims=True)          # [tn, 1]

    # Gather the RAW logit at the target class via a masked lane reduction,
    # then exponentiate only the tn gathered values (EUP, negligible).
    lane = jax.lax.broadcasted_iota(jnp.int32, (tn, C), 1)
    x_g = jnp.sum(jnp.where(lane == idx, x, 0.0), axis=-1, keepdims=True)

    # 1/s on the EUP (approx) + two Newton refinements on [tn,1] vregs to
    # restore f32 accuracy without adding work on the [tn,C] VALU path.
    inv_s = pl.reciprocal(s, approx=True)
    inv_s = inv_s * (2.0 - s * inv_s)
    inv_s = inv_s * (2.0 - s * inv_s)
    Yg = jnp.exp(x_g - m) * inv_s                  # [tn, 1] softmax prob of target

    const = (1.0 - k ** q) / q                     # python-time constant
    loss_i = ((1.0 - Yg ** q) / q - const) * w     # [tn, 1]

    # Tail masking: logits are NOT padded in HBM, so rows >= n_rows may hold
    # undefined data (possibly inf/nan). jnp.where is a select, so NaNs in
    # masked rows never propagate.
    row = (c * steps + i) * tn + jax.lax.broadcasted_iota(jnp.int32, (tn, 1), 0)
    loss_i = jnp.where(row < n_rows, loss_i, 0.0)

    out_ref[...] += loss_i                         # per-row partial sums


def truncated_loss(logits, targets, indexes, weight, *, q=0.7, k=0.5,
                   tile_n=1024, num_core_splits=None, class_labels=None):
    """Forward pass of TruncatedLoss (generalized cross entropy).

    logits:  [N, C] any float dtype (streamed in native dtype).
    targets: [N, C] one-hot targets. NOTE: soft / label-smoothed targets are
             converted via argmax (matches the torch module's usage).
    indexes: [N] int indices into `weight`.
    weight:  [trainset_size, 1] non-trainable per-sample weights.
    class_labels: optional [N] int class ids; if given, the dense one-hot
             argmax (an extra N*C HBM stream) is skipped entirely.
    Returns the scalar float32 mean loss.
    """
    N, C = logits.shape
    itemsize = jnp.dtype(logits.dtype).itemsize
    sub = 8 * max(1, 4 // itemsize)            # sublane granule: 8 f32, 16 bf16

    # --- tiny wrapper-side glue (small vs. streaming logits) ----------------
    if class_labels is None:
        class_labels = jnp.argmax(targets, axis=1)   # torch "first max wins" rule
    labels = class_labels.astype(jnp.int32).reshape(N, 1)
    w = weight[indexes].reshape(N, 1).astype(jnp.float32)

    # --- generation-aware sizing --------------------------------------------
    par = int(num_core_splits) if num_core_splits is not None else _cores_per_chip()
    par = max(1, par)
    vmem_cap = _vmem_capacity_bytes()
    # Per-row footprint: 2 pipeline buffers of native-dtype logits plus ~2x
    # [tn, C] f32 headroom for any temps Mosaic materializes (e.g. the f32
    # cast when logits are bf16). Keep the working set <= ~60% of physical
    # VMEM so it also fits v7x's 64 MiB.
    per_row_bytes = C * (2 * itemsize + 2 * 4)
    tn_vmem = max(sub, (int(0.6 * vmem_cap) // max(1, per_row_bytes)) // sub * sub)
    tn_need = _round_up(max(-(-N // par), 1), sub)
    tn = max(sub, min(_round_up(tile_n, sub), tn_vmem, tn_need))

    steps = -(-N // (par * tn))                # sequential row-tiles per core
    n_row_blocks = -(-N // tn)                 # real row-tiles that cover N rows

    # logits stay unpadded (no full-array HBM copy). Only the tiny per-row
    # sidecars are padded so every (clamped) block read of them is in-bounds.
    rows_pad = n_row_blocks * tn
    if rows_pad != N:
        labels = jnp.pad(labels, ((0, rows_pad - N), (0, 0)))
        w = jnp.pad(w, ((0, rows_pad - N), (0, 0)))

    def row_map(c_, i_):
        b = c_ * steps + i_
        # Clamp: grid tiles past the last real row-block re-read that block;
        # their logical rows are >= N and masked to zero in-kernel.
        return (jnp.minimum(b, n_row_blocks - 1), 0)

    kernel = functools.partial(_truncated_loss_kernel, q=q, k=k,
                               n_rows=N, steps=steps)

    cost = pl.CostEstimate(
        flops=int(8 * N * C),
        transcendentals=int(N * C),
        bytes_accessed=int(N * C * itemsize + 8 * N + 4 * par * tn),
    )

    out = pl.pallas_call(
        kernel,
        out_shape=jax.ShapeDtypeStruct((par * tn, 1), jnp.float32),
        grid_spec=pltpu.PrefetchScalarGridSpec(
            num_scalar_prefetch=0,
            grid=(par, steps),
            in_specs=[
                pl.BlockSpec((tn, C), row_map),    # logits (native dtype)
                pl.BlockSpec((tn, 1), row_map),    # class indices
                pl.BlockSpec((tn, 1), row_map),    # gathered weights
            ],
            out_specs=pl.BlockSpec((tn, 1), lambda c_, i_: (c_, 0)),
        ),
        compiler_params=pltpu.CompilerParams(
            # On v7x, pltpu.CORE_PARALLEL on axis 0 would shard explicitly
            # across the two TensorCores; "parallel" is the portable choice.
            dimension_semantics=("parallel", "arbitrary"),
            vmem_limit_bytes=max(32 * 1024 * 1024, int(0.75 * vmem_cap)),
        ),
        cost_estimate=cost,
    )(logits, labels, w)

    # Final reduction + mean on a tiny (par*tn, 1) array, outside the kernel.
    # TODO(synk): for tiny C (<128) lane utilization is C/128; a row-packed
    # layout or a lane-dense accumulator would help there.
    return jnp.sum(out) / jnp.float32(N)


def truncated_loss_ref(logits, targets, indexes, weight, *, q=0.7, k=0.5):
    p = jax.nn.softmax(logits.astype(jnp.float32), axis=1)
    idx = jnp.argmax(targets, axis=1)
    Yg = jnp.take_along_axis(p, idx[:, None], axis=1)            # [N, 1]
    w = weight[indexes].reshape(-1, 1)
    loss = (1.0 - Yg ** q) / q * w - (1.0 - k ** q) / q * w
    return jnp.mean(loss)


# TODO(synk): updateWeight() (the in-place weight[indexes] refresh) is not a
# forward-pass op and is left unimplemented.

if __name__ == "__main__":
    trainset_size = 64
    weight = jnp.ones((trainset_size, 1), dtype=jnp.float32)     # module __init__
    k1, k2, k3, k4, k5, k6 = jax.random.split(jax.random.PRNGKey(0), 6)

    # Case 1: small, tile-aligned batch (standard call with one-hot targets).
    N, C = 8, 32
    logits = jax.random.normal(k1, (N, C), dtype=jnp.float32)
    labels = jax.random.randint(k2, (N,), 0, C)
    targets = jax.nn.one_hot(labels, C, dtype=jnp.float32)
    indexes = jax.random.randint(k3, (N,), 0, trainset_size).astype(jnp.int32)

    out = jax.block_until_ready(
        truncated_loss(logits, targets, indexes, weight, q=0.7, k=0.5))
    ref = truncated_loss_ref(logits, targets, indexes, weight, q=0.7, k=0.5)
    assert jnp.allclose(out, ref, rtol=1e-4, atol=1e-5), (out, ref)

    # Case 2: ragged batch (exercises unpadded-logits tail masking) and the
    # integer-label fast path that skips the one-hot argmax.
    N2, C2 = 13, 160
    logits2 = jax.random.normal(k4, (N2, C2), dtype=jnp.float32)
    labels2 = jax.random.randint(k5, (N2,), 0, C2)
    targets2 = jax.nn.one_hot(labels2, C2, dtype=jnp.float32)
    indexes2 = jax.random.randint(k6, (N2,), 0, trainset_size).astype(jnp.int32)

    out2 = jax.block_until_ready(
        truncated_loss(logits2, targets2, indexes2, weight, q=0.7, k=0.5,
                       class_labels=labels2))
    ref2 = truncated_loss_ref(logits2, targets2, indexes2, weight, q=0.7, k=0.5)
    assert jnp.allclose(out2, ref2, rtol=1e-4, atol=1e-5), (out2, ref2)

    print("KERNEL_OK")
</pallas_src>

<mosaic_0001>
module attributes {stable_mosaic.version = 11 : i64} {
  func.func @_truncated_loss_kernel(%arg0: i32, %arg1: i32, %arg2: memref<8x32xf32, #tpu.memory_space<vmem>>, %arg3: memref<8x1xi32, #tpu.memory_space<vmem>>, %arg4: memref<8x1xf32, #tpu.memory_space<vmem>>, %arg5: memref<8x1xf32, #tpu.memory_space<vmem>>) attributes {dimension_semantics = [#tpu.dimension_semantics<parallel>, #tpu.dimension_semantics<arbitrary>], iteration_bounds = array<i64: 1, 1>, scalar_prefetch = 0 : i64, scratch_operands = 0 : i64, tpu.core_type = #tpu.core_type<tc>, window_params = [{transform_indices = @transform_0, window_bounds = array<i64: 8, 32>}, {transform_indices = @transform_1, window_bounds = array<i64: 8, 1>}, {transform_indices = @transform_2, window_bounds = array<i64: 8, 1>}, {transform_indices = @transform_3, window_bounds = array<i64: 8, 1>}]} {
    %c0_i32 = arith.constant 0 : i32
    %0 = arith.cmpi eq, %arg1, %c0_i32 : i32
    %1 = arith.extui %0 : i1 to i32
    %c0_i32_0 = arith.constant 0 : i32
    %2 = arith.cmpi ne, %1, %c0_i32_0 : i32
    scf.if %2 {
      %cst_21 = arith.constant 0.000000e+00 : f32
      %54 = vector.broadcast %cst_21 : f32 to vector<8x1xf32>
      %c0_22 = arith.constant 0 : index
      %c0_23 = arith.constant 0 : index
      %55 = vector.load %arg5[%c0_22, %c0_23] : memref<8x1xf32, #tpu.memory_space<vmem>>, vector<8x1xf32>
      tpu.vector_store %arg5[%c0_22, %c0_23], %54 {strides = array<i32>} : memref<8x1xf32, #tpu.memory_space<vmem>>, vector<8x1xf32>,
    } else {
    }
    %c0 = arith.constant 0 : index
    %c0_1 = arith.constant 0 : index
    %3 = vector.load %arg2[%c0, %c0_1] : memref<8x32xf32, #tpu.memory_space<vmem>>, vector<8x32xf32>
    %c0_2 = arith.constant 0 : index
    %c0_3 = arith.constant 0 : index
    %4 = vector.load %arg3[%c0_2, %c0_3] : memref<8x1xi32, #tpu.memory_space<vmem>>, vector<8x1xi32>
    %c0_4 = arith.constant 0 : index
    %c0_5 = arith.constant 0 : index
    %5 = vector.load %arg4[%c0_4, %c0_5] : memref<8x1xf32, #tpu.memory_space<vmem>>, vector<8x1xf32>
    %cst = arith.constant dense<0xFF800000> : vector<8xf32>
    %6 = vector.multi_reduction <maximumf>, %3, %cst [1] : vector<8x32xf32> to vector<8xf32>
    %7 = vector.shape_cast %6 : vector<8xf32> to vector<8x1xf32>
    %8 = vector.broadcast %7 : vector<8x1xf32> to vector<8x32xf32>
    %9 = arith.subf %3, %8 : vector<8x32xf32>
    %10 = math.exp %9 : vector<8x32xf32>
    %cst_6 = arith.constant dense<0.000000e+00> : vector<8xf32>
    %11 = vector.multi_reduction <add>, %10, %cst_6 [1] : vector<8x32xf32> to vector<8xf32>
    %12 = vector.shape_cast %11 : vector<8xf32> to vector<8x1xf32>
    %13 = tpu.iota {dimensions = array<i32: 1>} : vector<8x32xi32>
    %14 = vector.broadcast %4 : vector<8x1xi32> to vector<8x32xi32>
    %15 = arith.cmpi eq, %13, %14 : vector<8x32xi32>
    %cst_7 = arith.constant 0.000000e+00 : f32
    %16 = vector.broadcast %cst_7 : f32 to vector<8x32xf32>
    %17 = arith.select %15, %3, %16 : vector<8x32xi1>, vector<8x32xf32>
    %cst_8 = arith.constant dense<0.000000e+00> : vector<8xf32>
    %18 = vector.multi_reduction <add>, %17, %cst_8 [1] : vector<8x32xf32> to vector<8xf32>
    %19 = vector.shape_cast %18 : vector<8xf32> to vector<8x1xf32>
    %20 = tpu.reciprocal %12 {approx = true} : vector<8x1xf32> -> vector<8x1xf32>
    %21 = arith.mulf %12, %20 : vector<8x1xf32>
    %cst_9 = arith.constant 2.000000e+00 : f32
    %22 = vector.broadcast %cst_9 : f32 to vector<8x1xf32>
    %23 = arith.subf %22, %21 : vector<8x1xf32>
    %24 = arith.mulf %20, %23 : vector<8x1xf32>
    %25 = arith.mulf %12, %24 : vector<8x1xf32>
    %cst_10 = arith.constant 2.000000e+00 : f32
    %26 = vector.broadcast %cst_10 : f32 to vector<8x1xf32>
    %27 = arith.subf %26, %25 : vector<8x1xf32>
    %28 = arith.mulf %24, %27 : vector<8x1xf32>
    %29 = arith.subf %19, %7 : vector<8x1xf32>
    %30 = math.exp %29 : vector<8x1xf32>
    %31 = arith.mulf %30, %28 : vector<8x1xf32>
    %cst_11 = arith.constant 0.699999988 : f32
    %32 = vector.broadcast %cst_11 : f32 to vector<8x1xf32>
    %33 = math.powf %31, %32 : vector<8x1xf32>
    %cst_12 = arith.constant 1.000000e+00 : f32
    %34 = vector.broadcast %cst_12 : f32 to vector<8x1xf32>
    %35 = arith.subf %34, %33 : vector<8x1xf32>
    %cst_13 = arith.constant 0.699999988 : f32
    %36 = vector.broadcast %cst_13 : f32 to vector<8x1xf32>
    %37 = arith.divf %35, %36 : vector<8x1xf32>
    %cst_14 = arith.constant 0.549182534 : f32
    %38 = vector.broadcast %cst_14 : f32 to vector<8x1xf32>
    %39 = arith.subf %37, %38 : vector<8x1xf32>
    %40 = arith.mulf %39, %5 : vector<8x1xf32>
    %c1_i32 = arith.constant 1 : i32
    %41 = arith.muli %arg0, %c1_i32 : i32
    %42 = arith.addi %41, %arg1 : i32
    %c8_i32 = arith.constant 8 : i32
    %43 = arith.muli %42, %c8_i32 : i32
    %44 = tpu.iota {dimensions = array<i32: 0>} : vector<8x1xi32>
    %45 = vector.broadcast %43 : i32 to vector<8x1xi32>
    %46 = arith.addi %45, %44 : vector<8x1xi32>
    %c8_i32_15 = arith.constant 8 : i32
    %47 = vector.broadcast %c8_i32_15 : i32 to vector<8x1xi32>
    %48 = arith.cmpi slt, %46, %47 : vector<8x1xi32>
    %cst_16 = arith.constant 0.000000e+00 : f32
    %49 = vector.broadcast %cst_16 : f32 to vector<8x1xf32>
    %50 = arith.select %48, %40, %49 : vector<8x1xi1>, vector<8x1xf32>
    %c0_17 = arith.constant 0 : index
    %c0_18 = arith.constant 0 : index
    %51 = vector.load %arg5[%c0_17, %c0_18] : memref<8x1xf32, #tpu.memory_space<vmem>>, vector<8x1xf32>
    %52 = arith.addf %51, %50 : vector<8x1xf32>
    %c0_19 = arith.constant 0 : index
    %c0_20 = arith.constant 0 : index
    %53 = vector.load %arg5[%c0_19, %c0_20] : memref<8x1xf32, #tpu.memory_space<vmem>>, vector<8x1xf32>
    tpu.vector_store %arg5[%c0_19, %c0_20], %52 {strides = array<i32>} : memref<8x1xf32, #tpu.memory_space<vmem>>, vector<8x1xf32>,
    return
  }
  func.func @transform_0(%arg0: i32, %arg1: i32) -> (i32, i32) {
    %c1_i32 = arith.constant 1 : i32
    %0 = arith.muli %arg0, %c1_i32 : i32
    %1 = arith.addi %0, %arg1 : i32
    %c0_i32 = arith.constant 0 : i32
    %2 = arith.minsi %1, %c0_i32 : i32
    %c0_i32_0 = arith.constant 0 : i32
    %c0_i32_1 = arith.constant 0 : i32
    return %2, %c0_i32_0 : i32, i32
  }
  func.func @transform_1(%arg0: i32, %arg1: i32) -> (i32, i32) {
    %c1_i32 = arith.constant 1 : i32
    %0 = arith.muli %arg0, %c1_i32 : i32
    %1 = arith.addi %0, %arg1 : i32
    %c0_i32 = arith.constant 0 : i32
    %2 = arith.minsi %1, %c0_i32 : i32
    %c0_i32_0 = arith.constant 0 : i32
    %c0_i32_1 = arith.constant 0 : i32
    return %2, %c0_i32_0 : i32, i32
  }
  func.func @transform_2(%arg0: i32, %arg1: i32) -> (i32, i32) {
    %c1_i32 = arith.constant 1 : i32
    %0 = arith.muli %arg0, %c1_i32 : i32
    %1 = arith.addi %0, %arg1 : i32
    %c0_i32 = arith.constant 0 : i32
    %2 = arith.minsi %1, %c0_i32 : i32
    %c0_i32_0 = arith.constant 0 : i32
    %c0_i32_1 = arith.constant 0 : i32
    return %2, %c0_i32_0 : i32, i32
  }
  func.func @transform_3(%arg0: i32, %arg1: i32) -> (i32, i32) {
    %c0_i32 = arith.constant 0 : i32
    %c0_i32_0 = arith.constant 0 : i32
    return %arg0, %c0_i32 : i32, i32
  }
}

</mosaic_0001>

<bundles_post_ra>
// kernel: tpu_custom_call.1
= control target key start
LH: loop header
LB: loop body
LE: loop exit
PB: predicated region body
PF: predicated region fallthrough
CT: control target
= control target key end

     0   :  { %vm104_vm0 = vcmask 261120   ;;  %v267_v1 = vmov 0   ;;  %v114_v9 = vlaneseq  ;;  %vm99_vm2 = vcmask 7168   ;;  %s323_s0 = inlined_call_operand.vmem [shape: f32[8,32], index: 0, kind: input, shape index: {}]   ;;  %s324_s1 = inlined_call_operand.vmem [shape: s32[8,1], index: 1, kind: input, shape index: {}]   ;;  %s325_s3 = inlined_call_operand.vmem [shape: f32[8,1], index: 3, kind: output, shape index: {}]   ;;  %s326_s2 = inlined_call_operand.vmem [shape: f32[8,1], index: 2, kind: input, shape index: {}]  }
   0x1   :  { %v101_v0 = vld [vmem:[%s323_s0] sm:$0xff]  ;;  %256 = vset.pattern.permute.xlu0 %v267_v1  ;;  %v268_v14 = vmov 0.0   ;;  %v269_v54 = vmov 0.7  }
   0x2   :  { %v105_v2 = vsel %vm104_vm0, %v101_v0, -inf  ;;  %v102_v3 = vld [vmem:[%s324_s1] sm:$0xff]  ;;  %v115_v10 = vand.u32 127, %v114_v9  ;;  %100 = vst.msk [vmem:[%s325_s3] sm:$0xff] %vm99_vm2, %v268_v14 }
   0x3   :  { %106 = vmax.xlane.f32.xlu0 %v105_v2 }
  0x17   :  { %117 = vperm.xlu0 %256, %v102_v3  }
  0x76   :  { %v107_v4 = vpop.xlane.xlu0 %106 }
  0x77   :  { %v108_v5 = vsub.f32 %v101_v0, %v107_v4 }
  0x79   :  { %v109_v6 = vmul.f32 1.442695, %v108_v5 }
  0x7b   :  { %257 = vpow2.f32 %v109_v6 }
  0x81   :  { %v258_v7 = vpop.eup %257 }
  0x82   :  { %v111_v8 = vsel %vm104_vm0, %v258_v7, 0.0 }
  0x83   :  { %112 = vadd.xlane.f32.xlu1 %v111_v8 }
  0x89   :  { %v118_v11 = vpop.permute.xlu0 %117 }
  0x8a   :  { %vm119_vm1 = vcmp.eq.s32.totalorder %v115_v10, %v118_v11 }
  0x8b   :  { %v120_v12 = vsel %vm119_vm1, %v101_v0, 0.0 }
  0x8c   :  { %v121_v13 = vsel %vm104_vm0, %v120_v12, 0.0 }
  0x8d   :  { %122 = vadd.xlane.f32.xlu1 %v121_v13 }
  0xf6   :  { %v113_v15 = vpop.xlane.xlu1 %112 }
  0xf7   :  { %259 = vrcp.f32 %v113_v15 }
  0xfd   :  { %v260_v16 = vpop.eup %259 }
  0xfe   :  { %v125_v17 = vmul.f32 %v260_v16, %v113_v15 }
 0x100   :  { %v126_v18 = vsub.f32 2.0, %v125_v17  ;;  %v123_v19 = vpop.xlane.xlu1 %122  ;;  %v103_v17 = vld [vmem:[%s326_s2] sm:$0xff] }
 0x101   :  { %v131_v20 = vsub.f32 %v123_v19, %v107_v4  ;;  %v155_v19 = vld [vmem:[%s325_s3] sm:$0xff] }
 0x102   :  { %v127_v21 = vmul.f32 %v260_v16, %v126_v18 }
 0x103   :  { %v132_v22 = vmul.f32 1.442695, %v131_v20 }
 0x104   :  { %v128_v23 = vmul.f32 %v127_v21, %v113_v15 }
 0x105   :  { %261 = vpow2.f32 %v132_v22 }
 0x106   :  { %v129_v24 = vsub.f32 2.0, %v128_v23  ;;  %263 = vrcp.f32 %v269_v54 }
 0x108   :  { %v130_v25 = vmul.f32 %v129_v24, %v127_v21 }
 0x10b   :  { %v262_v26 = vpop.eup %261 }
 0x10c   :  { %v303_v27 = vmul.f32 %v262_v26, %v130_v25  ;;  %v264_v61 = vpop.eup %263 }
 0x10d   :  { %v138_v0 = vmul.f32 0.7, %v264_v61  ;;  %vm142_vm10 = vweird.f32 %v264_v61 }
 0x10e   :  { %v186_v28 = vand.u32 2147483647, %v303_v27  ;;  %vm233_vm8 = vcmp.lt.f32.partialorder %v303_v27, 0  ;;  %vm234_vm9 = vcmp.eq.f32.partialorder %v303_v27, 0  ;;  %vm246_vm12 = vcmp.ne.f32.partialorder %v303_v27, %v303_v27 }
 0x10f   :  { %v139_v5 = vsub.f32 1.0, %v138_v0  ;;  %vm235_vm13 = vcmp.eq.f32.partialorder %v303_v27, 1065353216 }
 0x110   :  { %v192_v29 = vand.u32 8388607, %v186_v28  ;;  %v188_v37 = vand.u32 2139095040, %v186_v28  ;;  %vm226_vm4 = vweird.f32 %v186_v28  ;;  %vm225_vm5 = vcmp.lt.f32.partialorder %v186_v28, 0.0 }
 0x111   :  { %vm224_vm6 = vcmp.eq.f32.partialorder %v186_v28, 0.0  ;;  %vm223_vm7 = vcmp.eq.f32.partialorder %v186_v28, 1.0  ;;  %v140_v6 = vmul.f32 %v264_v61, %v139_v5  ;;  %vm238_vm11 = vcmp.eq.f32.partialorder %v186_v28, 2139095040 }
 0x112   :  { %v193_v30 = vor.u32 8388608, %v192_v29  ;;  %v189_v42 = vshrl.u32 %v188_v37, 23 }
 0x113   :  { %v141_v8 = vadd.f32 %v264_v61, %v140_v6 }
 0x114   :  { %v195_v31 = vand.u32 8388607, %v193_v30  ;;  %v251_v47 = vadd.s32 4294967169, %v189_v42 }
 0x115   :  { %v143_v13 = vsel %vm142_vm10, %v264_v61, %v141_v8 }
 0x116   :  { %v196_v32 = vor.u32 1065353216, %v195_v31  ;;  %v200_v52 = vadd.s32 1, %v251_v47 }
 0x118   :  { %vm197_vm3 = vcmp.ge.f32.partialorder %v196_v32, 1.4142135  ;;  %v198_v33 = vmul.f32 0.5, %v196_v32 }
 0x119   :  { %v201_v57 = vsel %vm197_vm3, %v200_v52, %v251_v47 }
 0x11a   :  { %v199_v34 = vsel %vm197_vm3, %v198_v33, %v196_v32  ;;  %v221_v60 = vcvt.s32.f32 %v201_v57 }
 0x11b   :  { %v252_v35 = vadd.f32 -1.0, %v199_v34 }
 0x11d   :  { %v203_v36 = vmul.f32 %v252_v35, %v252_v35 }
 0x11f   :  { %v204_v38 = vmul.f32 0.12621109, %v203_v36  ;;  %v206_v39 = vmul.f32 -0.20706727, %v203_v36 }
 0x121   :  { %v205_v40 = vadd.f32 0.21545328, %v204_v38  ;;  %v207_v41 = vadd.f32 -0.23896284, %v206_v39 }
 0x123   :  { %v208_v43 = vmul.f32 %v205_v40, %v203_v36  ;;  %v210_v44 = vmul.f32 %v207_v41, %v203_v36 }
 0x125   :  { %v209_v45 = vadd.f32 0.28795174, %v208_v43  ;;  %v211_v46 = vadd.f32 -0.3607037, %v210_v44 }
 0x127   :  { %v212_v48 = vmul.f32 %v209_v45, %v203_v36  ;;  %v214_v49 = vmul.f32 %v211_v46, %v203_v36 }
 0x129   :  { %v213_v50 = vadd.f32 0.48090908, %v212_v48  ;;  %v215_v51 = vadd.f32 -0.72134733, %v214_v49 }
 0x12b   :  { %v216_v53 = vmul.f32 %v213_v50, %v203_v36  ;;  %v218_v56 = vmul.f32 %v252_v35, %v215_v51 }
 0x12d   :  { %v217_v55 = vadd.f32 1.442695, %v216_v53 }
 0x12f   :  { %v219_v58 = vadd.f32 %v218_v56, %v217_v55 }
 0x131   :  { %v220_v59 = vmul.f32 %v252_v35, %v219_v58 }
 0x133   :  { %v222_v62 = vadd.f32 %v221_v60, %v220_v59 }
 0x135   :  { %v227_v63 = vsel %vm226_vm4, %v186_v28, %v222_v62 }
 0x136   :  { %v228_v1 = vsel %vm225_vm5, nan, %v227_v63 }
 0x137   :  { %v229_v2 = vsel %vm224_vm6, -inf, %v228_v1 }
 0x138   :  { %v230_v3 = vsel %vm223_vm7, 0.0, %v229_v2 }
 0x139   :  { %v231_v4 = vmul.f32 0.7, %v230_v3 }
 0x13b   :  { %265 = vpow2.f32 %v231_v4 }
 0x141   :  { %v266_v7 = vpop.eup %265 }
 0x142   :  { %v239_v9 = vsel %vm233_vm8, 2143289344, %v266_v7 }
 0x143   :  { %v240_v10 = vsel %vm234_vm9, 0, %v239_v9 }
 0x144   :  { %v245_v11 = vsel %vm238_vm11, 2139095040, %v240_v10 }
 0x145   :  { %v249_v12 = vsel %vm246_vm12, 2143289344, %v245_v11 }
 0x146   :  { %v250_v14 = vsel %vm235_vm13, 1065353216, %v249_v12 }
 0x147   :  { %v136_v15 = vsub.f32 1.0, %v250_v14 }
 0x149   :  { %v144_v16 = vmul.f32 %v143_v13, %v136_v15 }
 0x14b   :  { %v181_v18 = vadd.f32 -0.54918253, %v144_v16 }
 0x14d   :  { %v146_v20 = vmul.f32 %v181_v18, %v103_v17 }
 0x14f   :  { %v156_v21 = vadd.f32 %v155_v19, %v146_v20 }
 0x151   :  { %158 = vst.msk [vmem:[%s325_s3] sm:$0xff] %vm99_vm2, %v156_v21 }

</bundles_post_ra>
